<compile_context>
chip_gen: v5e
topology: v5e:2x2
jax: 0.10.0
libtpu: 0.0.40
codegen_flags: <defaults>
</compile_context>

<pallas_src>
import functools

import jax
import jax.numpy as jnp
from jax.experimental import pallas as pl
from jax.experimental.pallas import tpu as pltpu


def _se_kernel(x_ref, w1_ref, b1_ref, w2_ref, b2_ref, o_ref, *, inv_hw):
    # x_ref/o_ref: VMEM (1, C, HWp) in native dtype.
    # w1_ref: (C_mid, C) f32 (BN folded in), b1_ref: (C_mid, 1) f32
    # w2_ref: (C, C_mid) f32, b2_ref: (C, 1) f32
    x = x_ref[...]                                            # (1, C, HWp), native dtype

    # 1) global average pool: f32 accumulation, C stays on sublanes.
    #    Padded lanes are zero so they do not perturb the sum; inv_hw uses
    #    the true (unpadded) spatial size.
    m = jnp.sum(x.astype(jnp.float32), axis=-1, keepdims=True)[0] * inv_hw   # (C, 1)

    # 2) 1x1 conv (C -> C_mid) with eval-mode BN folded in, then ReLU.
    h = jnp.dot(w1_ref[...], m, preferred_element_type=jnp.float32) + b1_ref[...]
    h = jnp.maximum(h, 0.0)                                   # (C_mid, 1)

    # 3) 1x1 conv (C_mid -> C), sigmoid gate.
    y = jnp.dot(w2_ref[...], h, preferred_element_type=jnp.float32) + b2_ref[...]
    s = jax.nn.sigmoid(y)                                     # (C, 1)

    # 4) scale: native-dtype multiply; (1, C, 1) -> (1, C, HWp) is a free
    #    lane broadcast because C is already on the sublane axis.
    o_ref[...] = x * s[None].astype(x.dtype)


def se_forward(x, conv1_w, conv1_b, conv2_w, conv2_b,
               bn_gamma, bn_beta, bn_mean, bn_var, bn_eps=1e-5):
    """x: (N, C, H, W); conv1_w: (C_mid, C, 1, 1); conv2_w: (C, C_mid, 1, 1)."""
    N, C, H, W = x.shape
    C_mid = conv1_w.shape[0]
    HW = H * W
    HWp = ((HW + 127) // 128) * 128                           # lane-dense last dim

    x2 = x.reshape(N, C, HW)
    if HWp != HW:
        x2 = jnp.pad(x2, ((0, 0), (0, 0), (0, HWp - HW)))

    # Fold eval-mode BatchNorm into the first 1x1 conv (mathematically exact).
    inv_std = jax.lax.rsqrt(bn_var.astype(jnp.float32) + bn_eps)
    bn_scale = bn_gamma.astype(jnp.float32) * inv_std                    # (C_mid,)
    bn_shift = bn_beta.astype(jnp.float32) - bn_mean.astype(jnp.float32) * bn_scale
    w1_eff = conv1_w.reshape(C_mid, C).astype(jnp.float32) * bn_scale[:, None]
    b1_eff = (conv1_b.astype(jnp.float32) * bn_scale + bn_shift).reshape(C_mid, 1)
    w2_m = conv2_w.reshape(C, C_mid).astype(jnp.float32)
    b2_m = conv2_b.astype(jnp.float32).reshape(C, 1)

    itemsize = jnp.dtype(x.dtype).itemsize
    slab_bytes = C * HWp * itemsize
    # 2x double-buffered (in + out) slabs + small weights + headroom.
    vmem_limit = int(min(96 * 2**20, max(16 * 2**20, 4 * slab_bytes + 2 * 2**20)))

    kernel = functools.partial(_se_kernel, inv_hw=1.0 / float(HW))

    out = pl.pallas_call(
        kernel,
        out_shape=jax.ShapeDtypeStruct((N, C, HWp), x.dtype),
        grid_spec=pltpu.PrefetchScalarGridSpec(
            num_scalar_prefetch=0,
            grid=(N,),
            in_specs=[
                pl.BlockSpec((1, C, HWp), lambda n: (n, 0, 0)),   # activation slab
                pl.BlockSpec((C_mid, C), lambda n: (0, 0)),       # conv1 (BN folded)
                pl.BlockSpec((C_mid, 1), lambda n: (0, 0)),       # conv1 bias
                pl.BlockSpec((C, C_mid), lambda n: (0, 0)),       # conv2
                pl.BlockSpec((C, 1), lambda n: (0, 0)),           # conv2 bias
            ],
            out_specs=pl.BlockSpec((1, C, HWp), lambda n: (n, 0, 0)),
        ),
        compiler_params=pltpu.CompilerParams(
            dimension_semantics=("parallel",),
            vmem_limit_bytes=vmem_limit,
        ),
        cost_estimate=pl.CostEstimate(
            flops=int(N * (2 * C * HW + 4 * C * C_mid)),
            transcendentals=int(N * C),
            bytes_accessed=int(2 * N * C * HWp * itemsize),
        ),
    )(x2, w1_eff, b1_eff, w2_m, b2_m)

    if HWp != HW:
        out = out[:, :, :HW]
    return out.reshape(N, C, H, W)


def se_reference(x, conv1_w, conv1_b, conv2_w, conv2_b,
                 bn_gamma, bn_beta, bn_mean, bn_var, bn_eps=1e-5):
    """Pure-JAX reference matching the PyTorch SE forward (BN in eval mode)."""
    N, C, H, W = x.shape
    C_mid = conv1_w.shape[0]
    xf = x.astype(jnp.float32)
    m = jnp.mean(xf, axis=(2, 3))                                        # (N, C)
    h = m @ conv1_w.reshape(C_mid, C).astype(jnp.float32).T + conv1_b    # (N, C_mid)
    h = (h - bn_mean) * jax.lax.rsqrt(bn_var + bn_eps) * bn_gamma + bn_beta
    h = jnp.maximum(h, 0.0)
    y = h @ conv2_w.reshape(C, C_mid).astype(jnp.float32).T + conv2_b    # (N, C)
    s = jax.nn.sigmoid(y)
    return (xf * s[:, :, None, None]).astype(x.dtype)


if __name__ == "__main__":
    key = jax.random.PRNGKey(0)
    ks = jax.random.split(key, 10)

    # Small shapes consistent with SE(in_channels=24, channels=24, se_ratio=12).
    N, C, H, W = 2, 24, 14, 14          # HW=196: exercises lane padding to 256
    se_ratio = 12
    C_mid = C // se_ratio               # 2

    x = jax.random.normal(ks[0], (N, C, H, W), dtype=jnp.float32)
    conv1_w = jax.random.normal(ks[1], (C_mid, C, 1, 1), dtype=jnp.float32) * 0.2
    conv1_b = jax.random.normal(ks[2], (C_mid,), dtype=jnp.float32) * 0.1
    conv2_w = jax.random.normal(ks[3], (C, C_mid, 1, 1), dtype=jnp.float32) * 0.2
    conv2_b = jax.random.normal(ks[4], (C,), dtype=jnp.float32) * 0.1
    bn_gamma = jax.random.uniform(ks[5], (C_mid,), dtype=jnp.float32,
                                  minval=0.5, maxval=1.5)
    bn_beta = jax.random.normal(ks[6], (C_mid,), dtype=jnp.float32) * 0.1
    bn_mean = jax.random.normal(ks[7], (C_mid,), dtype=jnp.float32) * 0.1
    bn_var = jnp.abs(jax.random.normal(ks[8], (C_mid,), dtype=jnp.float32)) + 0.5

    out = se_forward(x, conv1_w, conv1_b, conv2_w, conv2_b,
                     bn_gamma, bn_beta, bn_mean, bn_var)
    jax.block_until_ready(out)

    ref = se_reference(x, conv1_w, conv1_b, conv2_w, conv2_b,
                       bn_gamma, bn_beta, bn_mean, bn_var)
    assert out.shape == x.shape
    assert jnp.allclose(out, ref, atol=1e-5, rtol=1e-5), \
        float(jnp.max(jnp.abs(out - ref)))

    print("KERNEL_OK")
</pallas_src>

<mosaic_0001>
module attributes {stable_mosaic.version = 11 : i64} {
  func.func @_se_kernel(%arg0: i32, %arg1: memref<1x24x256xf32, #tpu.memory_space<vmem>>, %arg2: memref<2x24xf32, #tpu.memory_space<vmem>>, %arg3: memref<2x1xf32, #tpu.memory_space<vmem>>, %arg4: memref<24x2xf32, #tpu.memory_space<vmem>>, %arg5: memref<24x1xf32, #tpu.memory_space<vmem>>, %arg6: memref<1x24x256xf32, #tpu.memory_space<vmem>>) attributes {dimension_semantics = [#tpu.dimension_semantics<parallel>], iteration_bounds = array<i64: 2>, scalar_prefetch = 0 : i64, scratch_operands = 0 : i64, tpu.core_type = #tpu.core_type<tc>, window_params = [{transform_indices = @transform_0, window_bounds = array<i64: 1, 24, 256>}, {pipeline_mode = #tpu.pipeline_mode<synchronous>, transform_indices = @transform_1, window_bounds = array<i64: 2, 24>}, {pipeline_mode = #tpu.pipeline_mode<synchronous>, transform_indices = @transform_2, window_bounds = array<i64: 2, 1>}, {pipeline_mode = #tpu.pipeline_mode<synchronous>, transform_indices = @transform_3, window_bounds = array<i64: 24, 2>}, {pipeline_mode = #tpu.pipeline_mode<synchronous>, transform_indices = @transform_4, window_bounds = array<i64: 24, 1>}, {transform_indices = @transform_5, window_bounds = array<i64: 1, 24, 256>}]} {
    %c0 = arith.constant 0 : index
    %c0_0 = arith.constant 0 : index
    %c0_1 = arith.constant 0 : index
    %0 = vector.load %arg1[%c0, %c0_0, %c0_1] : memref<1x24x256xf32, #tpu.memory_space<vmem>>, vector<1x24x256xf32>
    %cst = arith.constant dense<0.000000e+00> : vector<1x24xf32>
    %1 = vector.multi_reduction <add>, %0, %cst [2] : vector<1x24x256xf32> to vector<1x24xf32>
    %2 = vector.shape_cast %1 : vector<1x24xf32> to vector<1x24x1xf32>
    %3 = vector.shape_cast %2 : vector<1x24x1xf32> to vector<24x1xf32>
    %cst_2 = arith.constant 0.00510204071 : f32
    %4 = vector.broadcast %cst_2 : f32 to vector<24x1xf32>
    %5 = arith.mulf %3, %4 : vector<24x1xf32>
    %c0_3 = arith.constant 0 : index
    %c0_4 = arith.constant 0 : index
    %6 = vector.load %arg2[%c0_3, %c0_4] : memref<2x24xf32, #tpu.memory_space<vmem>>, vector<2x24xf32>
    %cst_5 = arith.constant dense<0.000000e+00> : vector<2x1xf32>
    %7 = tpu.matmul %6, %5, %cst_5 {dimension_numbers = #tpu.dot_dimension_numbers<[1], [0], [0], [1], [0, 0, 1, 1], [], []>} : vector<2x24xf32>, vector<24x1xf32>, vector<2x1xf32> -> vector<2x1xf32>
    %c0_6 = arith.constant 0 : index
    %c0_7 = arith.constant 0 : index
    %8 = vector.load %arg3[%c0_6, %c0_7] : memref<2x1xf32, #tpu.memory_space<vmem>>, vector<2x1xf32>
    %9 = arith.addf %7, %8 : vector<2x1xf32>
    %cst_8 = arith.constant 0.000000e+00 : f32
    %10 = vector.broadcast %cst_8 : f32 to vector<2x1xf32>
    %11 = arith.maximumf %9, %10 : vector<2x1xf32>
    %c0_9 = arith.constant 0 : index
    %c0_10 = arith.constant 0 : index
    %12 = vector.load %arg4[%c0_9, %c0_10] : memref<24x2xf32, #tpu.memory_space<vmem>>, vector<24x2xf32>
    %cst_11 = arith.constant dense<0.000000e+00> : vector<24x1xf32>
    %13 = tpu.matmul %12, %11, %cst_11 {dimension_numbers = #tpu.dot_dimension_numbers<[1], [0], [0], [1], [0, 0, 1, 1], [], []>} : vector<24x2xf32>, vector<2x1xf32>, vector<24x1xf32> -> vector<24x1xf32>
    %c0_12 = arith.constant 0 : index
    %c0_13 = arith.constant 0 : index
    %14 = vector.load %arg5[%c0_12, %c0_13] : memref<24x1xf32, #tpu.memory_space<vmem>>, vector<24x1xf32>
    %15 = arith.addf %13, %14 : vector<24x1xf32>
    %16 = arith.negf %15 : vector<24x1xf32>
    %17 = math.exp %16 : vector<24x1xf32>
    %cst_14 = arith.constant 1.000000e+00 : f32
    %18 = vector.broadcast %cst_14 : f32 to vector<24x1xf32>
    %19 = arith.addf %18, %17 : vector<24x1xf32>
    %20 = arith.divf %18, %19 : vector<24x1xf32>
    %21 = vector.shape_cast %20 : vector<24x1xf32> to vector<1x24x1xf32>
    %22 = vector.broadcast %21 : vector<1x24x1xf32> to vector<1x24x256xf32>
    %23 = arith.mulf %0, %22 : vector<1x24x256xf32>
    %c0_15 = arith.constant 0 : index
    %c0_16 = arith.constant 0 : index
    %c0_17 = arith.constant 0 : index
    %24 = vector.load %arg6[%c0_15, %c0_16, %c0_17] : memref<1x24x256xf32, #tpu.memory_space<vmem>>, vector<1x24x256xf32>
    tpu.vector_store %arg6[%c0_15, %c0_16, %c0_17], %23 {strides = array<i32>} : memref<1x24x256xf32, #tpu.memory_space<vmem>>, vector<1x24x256xf32>,
    return
  }
  func.func @transform_0(%arg0: i32) -> (i32, i32, i32) {
    %c0_i32 = arith.constant 0 : i32
    %c0_i32_0 = arith.constant 0 : i32
    %c0_i32_1 = arith.constant 0 : i32
    return %arg0, %c0_i32, %c0_i32_0 : i32, i32, i32
  }
  func.func @transform_1(%arg0: i32) -> (i32, i32) {
    %c0_i32 = arith.constant 0 : i32
    %c0_i32_0 = arith.constant 0 : i32
    %c0_i32_1 = arith.constant 0 : i32
    return %c0_i32, %c0_i32_0 : i32, i32
  }
  func.func @transform_2(%arg0: i32) -> (i32, i32) {
    %c0_i32 = arith.constant 0 : i32
    %c0_i32_0 = arith.constant 0 : i32
    %c0_i32_1 = arith.constant 0 : i32
    return %c0_i32, %c0_i32_0 : i32, i32
  }
  func.func @transform_3(%arg0: i32) -> (i32, i32) {
    %c0_i32 = arith.constant 0 : i32
    %c0_i32_0 = arith.constant 0 : i32
    %c0_i32_1 = arith.constant 0 : i32
    return %c0_i32, %c0_i32_0 : i32, i32
  }
  func.func @transform_4(%arg0: i32) -> (i32, i32) {
    %c0_i32 = arith.constant 0 : i32
    %c0_i32_0 = arith.constant 0 : i32
    %c0_i32_1 = arith.constant 0 : i32
    return %c0_i32, %c0_i32_0 : i32, i32
  }
  func.func @transform_5(%arg0: i32) -> (i32, i32, i32) {
    %c0_i32 = arith.constant 0 : i32
    %c0_i32_0 = arith.constant 0 : i32
    %c0_i32_1 = arith.constant 0 : i32
    return %arg0, %c0_i32, %c0_i32_0 : i32, i32, i32
  }
}

</mosaic_0001>

<bundles_post_ra>
// kernel: tpu_custom_call.1
= control target key start
LH: loop header
LB: loop body
LE: loop exit
PB: predicated region body
PF: predicated region fallthrough
CT: control target
= control target key end

     0   :  { %10 = vsyncpa [#allocation3], 0  ;;  %s899_s0 = inlined_call_operand.hbm [shape: f32[2,24,256], index: 0, kind: input, shape index: {}]   ;;  %s900_s1 = inlined_call_operand.vmem [shape: f32[2,24], index: 1, kind: input, shape index: {}]   ;;  %s901_s2 = inlined_call_operand.vmem [shape: f32[2,1], index: 2, kind: input, shape index: {}]   ;;  %s902_s3 = inlined_call_operand.vmem [shape: f32[24,2], index: 3, kind: input, shape index: {}]   ;;  %s903_s4 = inlined_call_operand.vmem [shape: f32[24,1], index: 4, kind: input, shape index: {}]   ;;  %s904_s5 = inlined_call_operand.hbm [shape: f32[2,24,256], index: 5, kind: output, shape index: {}]  }
   0x1   :  { %12 = vsyncpa [#allocation3 + $0x1], 0 }
   0x2   :  { %13 = vsyncpa [#allocation4], 0 }
   0x3   :  { %15 = vsyncpa [#allocation4 + $0x1], 0  ;;  %s730_s18 = smov 0   ;;  %s732_s19 = smov 0  }
   0x4   :  { %s734_s20 = smov 0   ;;  %s736_s21 = smov 0  }
   0x5 LB: > { %s751_s22 = sadd.s32 4294967295, %s693_s21   ;;  %s509_s23 = sadd.s32 4294967294, %s693_s21   ;;  %s693_s21 = sphi %s736_s21, %s912_s21   ;;  %s689_s20 = sphi %s734_s20, %s911_s20   ;;  %s685_s19 = sphi %s732_s19, %s910_s19   ;;  %s681_s18 = sphi %s730_s18, %s909_s18  }
   0x6   : > { %s755_s24 = sadd.s32 1, %s693_s21   ;;  %s28_s25 = sadd.s32 1, %s689_s20 }
   0x7   : > { %s25_s26 = ssub.s32 %s693_s21, %s755_s24  ;;  %p35_p0 = scmp.ne.s32.totalorder %s689_s20, %s685_s19 }
   0x8   : > { %p26_p1 = scmp.eq.s32.totalorder %s25_s26, 0  ;;  %p36_p2 = scmp.eq.s32.totalorder %s693_s21, 0 }
   0x9   : > { %p41_p3 = scmp.ne.s32.totalorder %s685_s19, %s681_s18  ;;  %p42_p4 = scmp.eq.s32.totalorder %s751_s22, 0 }
   0xa   : > { %s767_s27 = scalar_select %p26_p1, %s689_s20, %s28_s25  }
   0xb   : > { %p37_p5 = por %p36_p2, %p35_p0  ;;  %p769_p6 = por %p42_p4, %p41_p3 }
   0xc   : > { %p149_p7 = scmp.eq.s32.totalorder %s751_s22, 1  ;;  %p155_p8 = scmp.eq.s32.totalorder %s509_s23, 1 }
   0xd   : > { %p511_p9 = scmp.ge.s32.totalorder %s693_s21, 2  ;;  %p543_p10 = scmp.lt.s32.totalorder %s693_s21, 2 }
   0xe   : > { %p776_p11 = por %p149_p7, %p35_p0  ;;  %p780_p12 = por %p155_p8, %p41_p3 }
   0xf   : > { %s187_s6 = sand.u32 1, %s689_s20   ;;  %s528_s7 = smul.u32 48, %s693_s21 }
  0x10   : > { %s527_s8 = smul.u32 48, %s187_s6  ;;  %p789_p13 = pnand %p543_p10, %p37_p5 }
  0x11   : > { %s196_s11 = scalar_lea.hbm %s899_s0, %s528_s7  ;;  %s188_s16 = scalar_lea.sflag [#allocation3], %s187_s6 }
  0x12   : > { %s197_s13 = sshll.u32 %s196_s11, 4  ;;  %s191_s14 = scalar_lea.vmem [#allocation2], %s527_s8  ;;  %s198_s13 = int_to_ptr.hbm [resolvable:$true] %s197_s13 }
  0x13   : > { %s199_s15 = sshll.u32 %s191_s14, 4  ;;  %s597_s17 = sshra.s32 %s198_s13, 4  ;;  %s200_s15 = int_to_ptr.vmem [resolvable:$true] %s199_s15  ;;  %s598_s17 = int_to_ptr.hbm [resolvable:$true] %s597_s17 }
  0x14   : > { %s599_s23 = scalar_lea.hbm %s598_s17, 48  ;;  %p601_p1 = pneg %p789_p13 }
  0x15   : > { %p600_p0 = scmp.ne.s32.totalorder %s598_s17, %s599_s23  ;;  %s604_s7 = scalar_lea.hbm %s899_s0, 96 }
  0x16   : > { %p605_p4 = scmp.lt.s32.totalorder %s598_s17, %s899_s0  ;;  %p606_p5 = scmp.lt.s32.totalorder %s604_s7, %s599_s23 }
  0x17   : > { %p602_p2 = pnand %p601_p1, %p600_p0 }
  0x18   : > { %p607_p7 = por %p606_p5, %p605_p4 }
  0x19   : > { %p603_p3 = pneg %p602_p2 }
  0x1b   : > { %p608_p8 = pnand %p607_p7, %p603_p3 }
  0x1d   : > { %611 = shalt.err (!%p608_p8)
}
  0x1e   : > { %s695_s6 = smov 256   ;;  %s696_s8 = smov 16  }
  0x1f   : > { %538 = dma.hbm_to_vmem [thread:$0]  (!%p789_p13), %s198_s13, 768, %s200_s15, %s188_s16, %s695_s6, %s695_s6, %s696_s8  }
  0x20   : > { %p513_p10 = scmp.ge.s32.totalorder %s693_s21, 1  ;;  %p207_p0 = scmp.lt.s32.totalorder %s693_s21, 3 }
  0x22   : > { %p208_p1 = pnand %p513_p10, %p207_p0 }
  0x23   : > { %s806_s11 = sand.u32 (!%p208_p1), 1, %s685_s19  }
  0x24   : > { %211 = sbr.rel (%p208_p1) target bundleno = 583 (0x247), region = 40  ;;  %s214_s17 = scalar_lea.sflag (!%p208_p1), [#allocation3], %s806_s11 }
  0x25   : > { %s529_s14 = smul.u32 (!%p208_p1), 48, %s806_s11 }
  0x27   : > { %s217_s23 = scalar_lea.vmem (!%p208_p1), [#allocation2], %s529_s14 }
  0x29   : > { %672 = dma.done.wait (%p769_p6), %s214_s17, 768  }
  0x2a   : > { %674 = vsyncadd (%p769_p6), %s214_s17, 4294966528  ;;  %v816_v0 = vld [vmem:[%s217_s23 + $0x20] sm:$0xff]  ;;  %v818_v1 = vld [vmem:[%s217_s23 + $0x28] sm:$0xff]  ;;  %vm265_vm0 = vcmask 195584   ;;  %vm306_vm1 = vcmask 1041408   ;;  %vm296_vm2 = vcmask 15360  }
  0x2b   : > { %v257_v2 = vadd.f32 %v818_v1, %v816_v0  ;;  %v822_v3 = vld [vmem:[%s217_s23] sm:$0xff]  ;;  %v824_v4 = vld [vmem:[%s217_s23 + $0x8] sm:$0xff]  ;;  %v828_v6 = vld [vmem:[%s217_s23 + $0x10] sm:$0xff]  ;;  %v697_v23 = vmov 0   ;;  %s244_s13 = scalar_lea.vmem [#allocation5], %s529_s14  ;;  %s530_s15 = smul.u32 48, %s751_s22 }
  0x2c   : > { %v251_v5 = vadd.f32 %v824_v4, %v822_v3  ;;  %v830_v7 = vld [vmem:[%s217_s23 + $0x18] sm:$0xff]  ;;  %v263_v15 = vld [vmem:[%s900_s1] sm:$0x3]  ;;  %v292_v22 = vld [vmem:[%s902_s3 + $0x10] sm:$0xff]  ;;  %582 = vset.pattern.permute.xlu1 %v697_v23  ;;  %583 = vset.pattern.permute.xlu2 %v697_v23  ;;  %s433_s7 = sshll.u32 %s244_s13, 4  ;;  %s421_s22 = scalar_lea.sflag [#allocation4], %s806_s11  ;;  %s434_s7 = int_to_ptr.vmem [resolvable:$true] %s433_s7 }
  0x2d   : > { %258 = vadd.xlane.f32.xlu0 %v257_v2  ;;  %v254_v8 = vadd.f32 %v830_v7, %v828_v6  ;;  %v264_v16 = vld [vmem:[%s901_s2] sm:$0x3]  ;;  %v291_v21 = vld [vmem:[%s902_s3 + $0x8] sm:$0xff]  ;;  %v295_v29 = vld [vmem:[%s903_s4 + $0x10] sm:$0xff]  ;;  %s432_s26 = scalar_lea.hbm %s904_s5, %s530_s15  ;;  %s647_s17 = scalar_lea.hbm %s904_s5, 96 }
  0x2e   : > { %252 = vadd.xlane.f32.xlu1 %v251_v5  ;;  %v290_v20 = vld [vmem:[%s902_s3] sm:$0xff]  ;;  %584 = vset.pattern.permute.xlu0 %v697_v23  ;;  %v294_v28 = vld [vmem:[%s903_s4 + $0x8] sm:$0xff]  ;;  %s435_s9 = sshll.u32 %s432_s26, 4  ;;  %s436_s9 = int_to_ptr.hbm [resolvable:$true] %s435_s9 }
  0x2f   : > { %v293_v24 = vld [vmem:[%s903_s4] sm:$0xff]  ;;  %s641_s14 = sshra.s32 %s436_s9, 4  ;;  %s642_s14 = int_to_ptr.hbm [resolvable:$true] %s641_s14 }
  0x30   : > { %s643_s10 = scalar_lea.hbm %s642_s14, 48  ;;  %p648_p3 = scmp.lt.s32.totalorder %s642_s14, %s904_s5 }
  0x31   : > { %p644_p6 = scmp.ne.s32.totalorder %s642_s14, %s643_s10  ;;  %p649_p4 = scmp.lt.s32.totalorder %s647_s17, %s643_s10 }
  0x33   : > { %p645_p13 = pnand %p644_p6, %p776_p11  ;;  %p650_p5 = por %p649_p4, %p648_p3 }
  0x35   : > { %255 = vadd.xlane.f32.xlu0 %v254_v8  ;;  %p646_p2 = pneg %p645_p13 }
  0x37   : > { %p651_p7 = pnand %p650_p5, %p646_p2 }
  0xa0   : > { %v259_v9 = vpop.xlane.xlu0 %258 }
  0xa1   : > { %v262_v10 = vmul.f32 0.0051020407, %v259_v9  ;;  %v253_v11 = vpop.xlane.xlu1 %252 }
  0xa2   : > { %v260_v14 = vmul.f32 0.0051020407, %v253_v11 }
  0xa3   : > { %282 = vmatpush.msra.mxu0 %v262_v10 }
  0xa8   : > { %v256_v12 = vpop.xlane.xlu0 %255 }
  0xa9   : > { %v261_v13 = vmul.f32 0.0051020407, %v256_v12 }
  0xab   : > { %283 = vmatpush.msra.mxu0 %v261_v13 }
  0xad   : > { %284 = vmatpush.msra.mxu0 %v260_v14 }
  0xae   : > { %514 = vmatmul.msk.f32.vlgmr.msra.gmra.mxu0 %vm265_vm0, %v263_v15 }
 0x12b   : > { %v286_v17 = vpop.f32.mrf.mxu0 }
 0x12c   : > { %v287_v18 = vadd.f32 %v286_v17, %v264_v16 }
 0x12e   : > { %v289_v19 = vmax.f32 %v287_v18, 0.0 }
 0x130   : > { %515 = vmatpush.msk.msra.mxu1 %vm306_vm1, %v289_v19  ;;  %525 = vmatpush.msk.msra.mxu2 %vm306_vm1, %v289_v19 }
 0x131   : > { %526 = vmatpush.msk.msra.mxu3 %vm306_vm1, %v289_v19  ;;  %516 = vmatmul.msk.f32.vlgmr.msra.gmra.mxu1 %vm296_vm2, %v290_v20 }
 0x132   : > { %517 = vmatmul.msk.f32.vlgmr.msra.gmra.mxu2 %vm296_vm2, %v291_v21  ;;  %518 = vmatmul.msk.f32.vlgmr.msra.gmra.mxu3 %vm296_vm2, %v292_v22 }
 0x1ae   : > { %v327_v25 = vpop.f32.mrf.mxu1 }
 0x1af   : > { %v328_v26 = vadd.f32 %v327_v25, %v293_v24 }
 0x1b1   : > { %v519_v27 = vmul.f32 -1.442695, %v328_v26 }
 0x1b3   : > { %585 = vpow2.f32 %v519_v27 }
 0x1b5   : > { %v330_v30 = vpop.f32.mrf.mxu2  ;;  %v333_v31 = vpop.f32.mrf.mxu3 }
 0x1b6   : > { %v331_v32 = vadd.f32 %v330_v30, %v294_v28  ;;  %v334_v33 = vadd.f32 %v333_v31, %v295_v29 }
 0x1b8   : > { %v520_v34 = vmul.f32 -1.442695, %v331_v32  ;;  %v521_v35 = vmul.f32 -1.442695, %v334_v33 }
 0x1b9   : > { %v586_v36 = vpop.eup %585 }
 0x1ba   : > { %v345_v37 = vadd.f32 1.0, %v586_v36  ;;  %587 = vpow2.f32 %v520_v34 }
 0x1bb   : > { %589 = vpow2.f32 %v521_v35 }
 0x1bc   : > { %591 = vrcp.f32 %v345_v37  ;;  %v359_v45 = vand.u32 2147483648, %v345_v37  ;;  %v357_v47 = vand.u32 2147483647, %v345_v37  ;;  %vm353_vm4 = vweird.f32 %v345_v37 }
 0x1be   : > { %v360_v51 = vor.u32 1.1754944e-38, %v359_v45  ;;  %vm358_vm6 = vcmp.eq.f32.partialorder %v357_v47, 8.507059e+37 }
 0x1c0   : > { %v588_v38 = vpop.eup %587 }
 0x1c1   : > { %v590_v39 = vpop.eup %589  ;;  %v346_v40 = vadd.f32 1.0, %v588_v38 }
 0x1c2   : > { %v592_v41 = vpop.eup %591  ;;  %v347_v42 = vadd.f32 1.0, %v590_v39 }
 0x1c3   : > { %593 = vrcp.f32 %v346_v40  ;;  %v349_v43 = vmul.f32 %v592_v41, %v345_v37  ;;  %vm354_vm3 = vweird.f32 %v592_v41  ;;  %v374_v57 = vand.u32 2147483648, %v346_v40 }
 0x1c4   : > { %595 = vrcp.f32 %v347_v42  ;;  %vm355_vm5 = vmor %vm353_vm4, %vm354_vm3  ;;  %vm368_vm7 = vweird.f32 %v346_v40  ;;  %v372_v60 = vand.u32 2147483647, %v346_v40  ;;  %vm383_vm11 = vweird.f32 %v347_v42 }
 0x1c5   : > { %v350_v44 = vsub.f32 1.0, %v349_v43  ;;  %v375_v63 = vor.u32 1.1754944e-38, %v374_v57  ;;  %v389_v8 = vand.u32 2147483648, %v347_v42  ;;  %v387_v10 = vand.u32 2147483647, %v347_v42 }
 0x1c6   : > { %vm373_vm10 = vcmp.eq.f32.partialorder %v372_v60, 8.507059e+37 }
 0x1c7   : > { %v351_v46 = vmul.f32 %v592_v41, %v350_v44  ;;  %v390_v11 = vor.u32 1.1754944e-38, %v389_v8  ;;  %vm388_vm14 = vcmp.eq.f32.partialorder %v387_v10, 8.507059e+37 }
 0x1c9   : > { %v594_v48 = vpop.eup %593  ;;  %v352_v49 = vadd.f32 %v592_v41, %v351_v46 }
 0x1ca   : > { %v596_v50 = vpop.eup %595  ;;  %v364_v52 = vmul.f32 %v594_v48, %v346_v40  ;;  %vm369_vm8 = vweird.f32 %v594_v48 }
 0x1cb   : > { %v356_v53 = vsel %vm355_vm5, %v592_v41, %v352_v49  ;;  %v379_v54 = vmul.f32 %v596_v50, %v347_v42  ;;  %vm370_vm9 = vmor %vm368_vm7, %vm369_vm8  ;;  %vm384_vm12 = vweird.f32 %v596_v50 }
 0x1cc   : > { %v361_v55 = vsel %vm358_vm6, %v360_v51, %v356_v53  ;;  %v365_v56 = vsub.f32 1.0, %v364_v52  ;;  %vm385_vm13 = vmor %vm383_vm11, %vm384_vm12 }
 0x1cd   : > { %395 = vperm.xlu1 %582, %v361_v55   ;;  %v380_v58 = vsub.f32 1.0, %v379_v54 }
 0x1ce   : > { %v366_v59 = vmul.f32 %v594_v48, %v365_v56 }
 0x1cf   : > { %v381_v62 = vmul.f32 %v596_v50, %v380_v58 }
 0x1d0   : > { %v367_v61 = vadd.f32 %v594_v48, %v366_v59 }
 0x1d1   : > { %v382_v9 = vadd.f32 %v596_v50, %v381_v62 }
 0x1d2   : > { %v371_v2 = vsel %vm370_vm9, %v594_v48, %v367_v61 }
 0x1d3   : > { %v376_v5 = vsel %vm373_vm10, %v375_v63, %v371_v2  ;;  %v386_v12 = vsel %vm385_vm13, %v596_v50, %v382_v9 }
 0x1d4   : > { %400 = vperm.xlu2 %583, %v376_v5   ;;  %v391_v13 = vsel %vm388_vm14, %v390_v11, %v386_v12 }
 0x1dc   : > { %405 = vperm.xlu2 %583, %v391_v13  }
 0x22e   : > { %v401_v14 = vpop.permute.xlu2 %400 }
 0x22f   : > { %v410_v15 = vmul.f32 %v401_v14, %v828_v6  ;;  %v411_v16 = vmul.f32 %v401_v14, %v830_v7 }
 0x231   : > { %416 = vst [vmem:[%s244_s13 + $0x10] sm:$0xff] %v410_v15 }
 0x232   : > { %417 = vst [vmem:[%s244_s13 + $0x18] sm:$0xff] %v411_v16 }
 0x236   : > { %v406_v17 = vpop.permute.xlu2 %405 }
 0x237   : > { %v412_v18 = vmul.f32 %v406_v17, %v816_v0  ;;  %v413_v19 = vmul.f32 %v406_v17, %v818_v1 }
 0x239   : > { %418 = vst [vmem:[%s244_s13 + $0x20] sm:$0xff] %v412_v18 }
 0x23a   : > { %419 = vst [vmem:[%s244_s13 + $0x28] sm:$0xff] %v413_v19 }
 0x23f   : > { %v396_v6 = vpop.permute.xlu1 %395 }
 0x240   : > { %v408_v7 = vmul.f32 %v396_v6, %v822_v3  ;;  %v409_v20 = vmul.f32 %v396_v6, %v824_v4 }
 0x242   : > { %414 = vst [vmem:[%s244_s13] sm:$0xff] %v408_v7 }
 0x243   : > { %415 = vst [vmem:[%s244_s13 + $0x8] sm:$0xff] %v409_v20 }
 0x244   : > { %654 = shalt.err (!%p651_p7)
}
 0x245   : > { %s698_s11 = smov 256   ;;  %s699_s12 = smov 16  }
 0x246   : > { %533 = dma.vmem_to_hbm [thread:$0]  (%p776_p11), %s434_s7, 768, %s436_s9, %s421_s22, %s698_s11, %s698_s11, %s699_s12  }
 0x247 PF: > { %s450_s13 = sand.u32 1, %s681_s18   ;;  %p540_p8 = pnand %p511_p9, %p780_p12 }
 0x248   : > { %s451_s15 = scalar_lea.sflag [#allocation4], %s450_s13 }
 0x249   : > { %p541_p10 = pneg %p540_p8 }
 0x24b   : > { %676 = dma.done.wait (%p541_p10), %s451_s15, 768  }
 0x24c   : > { %678 = vsyncadd (%p541_p10), %s451_s15, 4294966528  ;;  %p18_p0 = scmp.ge.s32.totalorder %s755_s24, 4   ;;  %s909_s18 = smov %s685_s19 }
 0x24d   : > { %s910_s19 = smov %s689_s20  ;;  %s911_s20 = smov %s767_s27 }
 0x24e   : > { %s912_s21 = smov %s755_s24  ;;  %20 = sbr.rel (!%p18_p0) target bundleno = 5 (0x5), region = 85 }
 0x253   :  { %457 = vsyncpa [#allocation3], 1 }
 0x254   :  { %459 = vsyncpa [#allocation3 + $0x1], 1 }
 0x255   :  { %460 = vsyncpa [#allocation4], 1 }
 0x256   :  { %462 = vsyncpa [#allocation4 + $0x1], 1 }

</bundles_post_ra>
